<compile_context>
chip_gen: v7x
topology: tpu7x:2x2x1
jax: 0.10.0
libtpu: 0.0.40
codegen_flags: <defaults>
</compile_context>

<pallas_src>
import functools

import numpy as np
import jax
import jax.numpy as jnp
from jax.experimental import pallas as pl
from jax.experimental.pallas import tpu as pltpu

# FSQ has no learned weights, only quantization levels.
FSQ_LEVELS = (8, 8, 8, 5, 5, 5)


def _fsq_constants(levels, eps=1e-3):
    """Per-channel FSQ constants (float32, identical to what the kernel bakes in)."""
    lv = np.asarray(levels, dtype=np.float32)
    li = np.asarray(levels, dtype=np.int64)
    half_l = (lv - 1.0) * (1.0 + eps) / 2.0                    # half range of code space
    offset = np.where(li % 2 == 0, 0.5, 0.0).astype(np.float32)
    shift = np.arctanh(offset / half_l).astype(np.float32)     # center even-level codes
    half_width = (li // 2).astype(np.float32)                  # normalization factor
    basis = np.concatenate(([1.0], np.cumprod(lv[:-1]))).astype(np.float32)
    return half_l, offset, shift, half_width, basis


# ----------------------------- Pallas kernel ---------------------------------------


def _fsq_kernel(z_ref, zq_ref, idx_ref, *, half_l, offset, shift,
                half_width, inv_half_width, basis):
    """One (B, D, tL) tile: channels on sublanes, sequence on lanes.

    Whole-slab compute: per-channel constants are (1, D, 1) sublane vectors built once
    from compile-time literals; the tanh/round/scale then runs over the full tile at
    full vreg occupancy and z_q is written with a single dense store.  The flat-index
    reduction over D is a sublane reduce (XLU slot, free alongside the VPU/EUP work).
    """
    B, D, tL = z_ref.shape
    d_iota = jax.lax.broadcasted_iota(jnp.int32, (1, D, 1), 1)

    def cvec(vals):
        # (1, D, 1) per-channel constant vector from Python-float literals (built once,
        # hoisted out of any loop; no captured-array constants).
        c = jnp.full((1, D, 1), float(vals[0]), dtype=jnp.float32)
        for d in range(1, D):
            c = jnp.where(d_iota == d, float(vals[d]), c)
        return c

    shift_v = cvec(shift)
    half_l_v = cvec(half_l)
    offset_v = cvec(offset)
    half_w_v = cvec(half_width)
    inv_hw_v = cvec(inv_half_width)
    basis_v = cvec(basis)

    z = z_ref[...].astype(jnp.float32)                         # (B, D, tL)
    bounded = jnp.tanh(z + shift_v) * half_l_v - offset_v      # EUP tanh + VPU FMAs
    q = jnp.round(bounded)                                     # quantized code (float)
    zq_ref[...] = (q * inv_hw_v).astype(zq_ref.dtype)          # ONE dense store

    code = (q + half_w_v) * basis_v                            # shift to [0, level-1]
    # sublane (XLU) reduce over D; max flat index = prod(levels)-1 < 2^24 -> exact in f32
    idx_ref[...] = jnp.sum(code, axis=1).astype(jnp.int32)
    # TODO(synk): forward only; training would need a custom_vjp straight-through estimator.


# ----------------------------- wrappers --------------------------------------------


def _pick_tile(L, B, max_bytes=8 << 20):
    """Largest lane-dense tile (multiple of 128) dividing L with a bounded VMEM footprint.

    Footprint model: double-buffered input + z_q tiles (8-padded sublanes, f32) plus the
    int32 index tile.  Also tries to leave >= 2 grid steps so v7x's two TensorCores can
    both work under dimension_semantics=("parallel",).
    """
    best = 128
    for t in (32768, 16384, 8192, 4096, 2048, 1024, 512, 256, 128):
        if L % t:
            continue
        footprint = 2 * (2 * B * 8 * t * 4 + B * t * 4)       # 2x buffers, in+zq+idx
        if footprint > max_bytes:
            continue
        best = t
        break
    if L // best < 2 and L // 2 > 0 and (L // 2) % 128 == 0:
        best = L // 2                                          # guarantee >= 2 grid steps
    return best


def fsq_block(z, levels=FSQ_LEVELS):
    """Concrete bottleneck block: FSQ quantizer on (B, D, L) channels-first latents.

    Returns (z_q, {'q': indices, 'z_q': z_q}) like the PyTorch block.
    """
    B, D, L = z.shape
    assert D == len(levels), "channel dim must equal number of FSQ levels"
    assert int(np.prod(levels)) < (1 << 24), "flat index must stay exact in float32"
    half_l, offset, shift, half_width, basis = _fsq_constants(levels)

    # Pad L to a multiple of 128 (lane-dense tiles, no masked stores, no single-block
    # fallback); padded tail is sliced off below.
    Lp = ((L + 127) // 128) * 128
    zp = z if Lp == L else jnp.pad(z, ((0, 0), (0, 0), (0, Lp - L)))

    kernel = functools.partial(
        _fsq_kernel,
        half_l=tuple(float(x) for x in half_l),
        offset=tuple(float(x) for x in offset),
        shift=tuple(float(x) for x in shift),
        half_width=tuple(float(x) for x in half_width),
        inv_half_width=tuple(1.0 / float(x) for x in half_width),  # 0.25 / 0.5, exact
        basis=tuple(float(x) for x in basis),
    )

    tL = _pick_tile(Lp, B)
    grid = (Lp // tL,)

    z_q, indices = pl.pallas_call(
        kernel,
        grid=grid,
        in_specs=[pl.BlockSpec((B, D, tL), lambda i: (0, 0, i))],
        out_specs=[
            pl.BlockSpec((B, D, tL), lambda i: (0, 0, i)),
            pl.BlockSpec((B, tL), lambda i: (0, i)),
        ],
        out_shape=[
            jax.ShapeDtypeStruct((B, D, Lp), z.dtype),
            jax.ShapeDtypeStruct((B, Lp), jnp.int32),
        ],
        compiler_params=pltpu.CompilerParams(
            dimension_semantics=("parallel",),   # v7x: split the L-grid across its 2 TCs
        ),
    )(zp)

    if Lp != L:
        z_q = z_q[:, :, :L]
        indices = indices[:, :L]
    return z_q, {"q": indices, "z_q": z_q}


def one_d_bottleneck(h, block=None):
    """JAX/Pallas equivalent of OneDBottleNeck.forward."""
    if block is None:
        # Identity path: no copy kernel -> no extra HBM read+write round trip.
        return h, {}
    z, d = block(h)
    ret_dict = {}
    # key remapping is pure Python glue, exactly as in the PyTorch module
    for in_key, out_key in (("q", "indices"), ("z_q", "z_q")):
        if in_key in d:
            ret_dict[out_key] = d[in_key]
    return z, ret_dict


# ----------------------------- main -------------------------------------------------


def _check_against_reference(h, z, ret, levels=FSQ_LEVELS):
    B, D, L = h.shape
    half_l, offset, shift, half_width, basis = _fsq_constants(levels)
    rs = lambda a: a.reshape(1, D, 1)
    hn = np.asarray(h, dtype=np.float32)
    hb = np.tanh(hn + rs(shift)) * rs(half_l) - rs(offset)
    qf = np.round(hb)
    zq_ref = qf / rs(half_width)
    idx_ref = np.sum((qf + rs(half_width)) * rs(basis), axis=1).astype(np.int32)

    # Hardware tanh may differ from numpy tanh by ~1 ulp; exclude elements that sit
    # within eps of a rounding boundary from the exact checks (codes could flip there).
    frac = np.abs(hb - np.floor(hb) - 0.5)
    safe_elem = frac > 1e-4                      # (B, D, L) safe for z_q comparison
    safe_pos = np.all(safe_elem, axis=1)         # (B, L)    safe for index comparison
    assert safe_elem.mean() > 0.9                # sanity: almost everything is checked

    z_np = np.asarray(z)
    zq_np = np.asarray(ret["z_q"])
    idx_np = np.asarray(ret["indices"])

    np.testing.assert_allclose(z_np[safe_elem], zq_ref[safe_elem], rtol=1e-5, atol=1e-5)
    np.testing.assert_allclose(zq_np[safe_elem], zq_ref[safe_elem], rtol=1e-5, atol=1e-5)
    np.testing.assert_array_equal(idx_np[safe_pos], idx_ref[safe_pos])
    assert idx_np.min() >= 0 and idx_np.max() < int(np.prod(levels))


if __name__ == "__main__":
    key = jax.random.PRNGKey(0)
    B, D, L = 2, len(FSQ_LEVELS), 1024       # small demo: batch=2, code dim=6, seq=1024
    h = jax.random.normal(key, (B, D, L), dtype=jnp.float32)

    # Path 1: block=None -> identity
    z_id, d_id = one_d_bottleneck(h, block=None)
    jax.block_until_ready(z_id)
    assert d_id == {}
    np.testing.assert_allclose(np.asarray(z_id), np.asarray(h))

    # Path 2: concrete FSQ bottleneck block (multiple-of-128 L -> grid of >= 2 steps)
    z, ret = one_d_bottleneck(h, block=fsq_block)
    jax.block_until_ready(z)
    jax.block_until_ready(ret["indices"])
    jax.block_until_ready(ret["z_q"])
    _check_against_reference(h, z, ret)

    # Path 2b: awkward L (not a multiple of 128) exercises the padded fallback path
    L2 = 1000
    h2 = jax.random.normal(jax.random.PRNGKey(1), (B, D, L2), dtype=jnp.float32)
    z2, ret2 = one_d_bottleneck(h2, block=fsq_block)
    jax.block_until_ready(z2)
    assert z2.shape == (B, D, L2) and ret2["indices"].shape == (B, L2)
    _check_against_reference(h2, z2, ret2)

    print("KERNEL_OK")
</pallas_src>

<mosaic_0001>
module attributes {stable_mosaic.version = 11 : i64} {
  func.func @_fsq_kernel(%arg0: i32, %arg1: memref<2x6x512xf32, #tpu.memory_space<vmem>>, %arg2: memref<2x6x512xf32, #tpu.memory_space<vmem>>, %arg3: memref<2x512xi32, #tpu.memory_space<vmem>>) attributes {dimension_semantics = [#tpu.dimension_semantics<parallel>], iteration_bounds = array<i64: 2>, scalar_prefetch = 0 : i64, scratch_operands = 0 : i64, tpu.core_type = #tpu.core_type<tc>, window_params = [{transform_indices = @transform_0, window_bounds = array<i64: 2, 6, 512>}, {transform_indices = @transform_1, window_bounds = array<i64: 2, 6, 512>}, {transform_indices = @transform_2, window_bounds = array<i64: 2, 512>}]} {
    %0 = tpu.iota {dimensions = array<i32: 1>} : vector<1x6x1xi32>
    %cst = arith.constant 0.143695354 : f32
    %1 = vector.broadcast %cst : f32 to vector<1x6x1xf32>
    %c1_i32 = arith.constant 1 : i32
    %2 = vector.broadcast %c1_i32 : i32 to vector<1x6x1xi32>
    %3 = arith.cmpi eq, %0, %2 : vector<1x6x1xi32>
    %cst_0 = arith.constant 0.143695354 : f32
    %4 = vector.broadcast %cst_0 : f32 to vector<1x6x1xf32>
    %5 = arith.select %3, %4, %1 : vector<1x6x1xi1>, vector<1x6x1xf32>
    %c2_i32 = arith.constant 2 : i32
    %6 = vector.broadcast %c2_i32 : i32 to vector<1x6x1xi32>
    %7 = arith.cmpi eq, %0, %6 : vector<1x6x1xi32>
    %cst_1 = arith.constant 0.143695354 : f32
    %8 = vector.broadcast %cst_1 : f32 to vector<1x6x1xf32>
    %9 = arith.select %7, %8, %5 : vector<1x6x1xi1>, vector<1x6x1xf32>
    %c3_i32 = arith.constant 3 : i32
    %10 = vector.broadcast %c3_i32 : i32 to vector<1x6x1xi32>
    %11 = arith.cmpi eq, %0, %10 : vector<1x6x1xi32>
    %cst_2 = arith.constant 0.000000e+00 : f32
    %12 = vector.broadcast %cst_2 : f32 to vector<1x6x1xf32>
    %13 = arith.select %11, %12, %9 : vector<1x6x1xi1>, vector<1x6x1xf32>
    %c4_i32 = arith.constant 4 : i32
    %14 = vector.broadcast %c4_i32 : i32 to vector<1x6x1xi32>
    %15 = arith.cmpi eq, %0, %14 : vector<1x6x1xi32>
    %cst_3 = arith.constant 0.000000e+00 : f32
    %16 = vector.broadcast %cst_3 : f32 to vector<1x6x1xf32>
    %17 = arith.select %15, %16, %13 : vector<1x6x1xi1>, vector<1x6x1xf32>
    %c5_i32 = arith.constant 5 : i32
    %18 = vector.broadcast %c5_i32 : i32 to vector<1x6x1xi32>
    %19 = arith.cmpi eq, %0, %18 : vector<1x6x1xi32>
    %cst_4 = arith.constant 0.000000e+00 : f32
    %20 = vector.broadcast %cst_4 : f32 to vector<1x6x1xf32>
    %21 = arith.select %19, %20, %17 : vector<1x6x1xi1>, vector<1x6x1xf32>
    %cst_5 = arith.constant 3.50350022 : f32
    %22 = vector.broadcast %cst_5 : f32 to vector<1x6x1xf32>
    %c1_i32_6 = arith.constant 1 : i32
    %23 = vector.broadcast %c1_i32_6 : i32 to vector<1x6x1xi32>
    %24 = arith.cmpi eq, %0, %23 : vector<1x6x1xi32>
    %cst_7 = arith.constant 3.50350022 : f32
    %25 = vector.broadcast %cst_7 : f32 to vector<1x6x1xf32>
    %26 = arith.select %24, %25, %22 : vector<1x6x1xi1>, vector<1x6x1xf32>
    %c2_i32_8 = arith.constant 2 : i32
    %27 = vector.broadcast %c2_i32_8 : i32 to vector<1x6x1xi32>
    %28 = arith.cmpi eq, %0, %27 : vector<1x6x1xi32>
    %cst_9 = arith.constant 3.50350022 : f32
    %29 = vector.broadcast %cst_9 : f32 to vector<1x6x1xf32>
    %30 = arith.select %28, %29, %26 : vector<1x6x1xi1>, vector<1x6x1xf32>
    %c3_i32_10 = arith.constant 3 : i32
    %31 = vector.broadcast %c3_i32_10 : i32 to vector<1x6x1xi32>
    %32 = arith.cmpi eq, %0, %31 : vector<1x6x1xi32>
    %cst_11 = arith.constant 2.002000e+00 : f32
    %33 = vector.broadcast %cst_11 : f32 to vector<1x6x1xf32>
    %34 = arith.select %32, %33, %30 : vector<1x6x1xi1>, vector<1x6x1xf32>
    %c4_i32_12 = arith.constant 4 : i32
    %35 = vector.broadcast %c4_i32_12 : i32 to vector<1x6x1xi32>
    %36 = arith.cmpi eq, %0, %35 : vector<1x6x1xi32>
    %cst_13 = arith.constant 2.002000e+00 : f32
    %37 = vector.broadcast %cst_13 : f32 to vector<1x6x1xf32>
    %38 = arith.select %36, %37, %34 : vector<1x6x1xi1>, vector<1x6x1xf32>
    %c5_i32_14 = arith.constant 5 : i32
    %39 = vector.broadcast %c5_i32_14 : i32 to vector<1x6x1xi32>
    %40 = arith.cmpi eq, %0, %39 : vector<1x6x1xi32>
    %cst_15 = arith.constant 2.002000e+00 : f32
    %41 = vector.broadcast %cst_15 : f32 to vector<1x6x1xf32>
    %42 = arith.select %40, %41, %38 : vector<1x6x1xi1>, vector<1x6x1xf32>
    %cst_16 = arith.constant 5.000000e-01 : f32
    %43 = vector.broadcast %cst_16 : f32 to vector<1x6x1xf32>
    %c1_i32_17 = arith.constant 1 : i32
    %44 = vector.broadcast %c1_i32_17 : i32 to vector<1x6x1xi32>
    %45 = arith.cmpi eq, %0, %44 : vector<1x6x1xi32>
    %cst_18 = arith.constant 5.000000e-01 : f32
    %46 = vector.broadcast %cst_18 : f32 to vector<1x6x1xf32>
    %47 = arith.select %45, %46, %43 : vector<1x6x1xi1>, vector<1x6x1xf32>
    %c2_i32_19 = arith.constant 2 : i32
    %48 = vector.broadcast %c2_i32_19 : i32 to vector<1x6x1xi32>
    %49 = arith.cmpi eq, %0, %48 : vector<1x6x1xi32>
    %cst_20 = arith.constant 5.000000e-01 : f32
    %50 = vector.broadcast %cst_20 : f32 to vector<1x6x1xf32>
    %51 = arith.select %49, %50, %47 : vector<1x6x1xi1>, vector<1x6x1xf32>
    %c3_i32_21 = arith.constant 3 : i32
    %52 = vector.broadcast %c3_i32_21 : i32 to vector<1x6x1xi32>
    %53 = arith.cmpi eq, %0, %52 : vector<1x6x1xi32>
    %cst_22 = arith.constant 0.000000e+00 : f32
    %54 = vector.broadcast %cst_22 : f32 to vector<1x6x1xf32>
    %55 = arith.select %53, %54, %51 : vector<1x6x1xi1>, vector<1x6x1xf32>
    %c4_i32_23 = arith.constant 4 : i32
    %56 = vector.broadcast %c4_i32_23 : i32 to vector<1x6x1xi32>
    %57 = arith.cmpi eq, %0, %56 : vector<1x6x1xi32>
    %cst_24 = arith.constant 0.000000e+00 : f32
    %58 = vector.broadcast %cst_24 : f32 to vector<1x6x1xf32>
    %59 = arith.select %57, %58, %55 : vector<1x6x1xi1>, vector<1x6x1xf32>
    %c5_i32_25 = arith.constant 5 : i32
    %60 = vector.broadcast %c5_i32_25 : i32 to vector<1x6x1xi32>
    %61 = arith.cmpi eq, %0, %60 : vector<1x6x1xi32>
    %cst_26 = arith.constant 0.000000e+00 : f32
    %62 = vector.broadcast %cst_26 : f32 to vector<1x6x1xf32>
    %63 = arith.select %61, %62, %59 : vector<1x6x1xi1>, vector<1x6x1xf32>
    %cst_27 = arith.constant 4.000000e+00 : f32
    %64 = vector.broadcast %cst_27 : f32 to vector<1x6x1xf32>
    %c1_i32_28 = arith.constant 1 : i32
    %65 = vector.broadcast %c1_i32_28 : i32 to vector<1x6x1xi32>
    %66 = arith.cmpi eq, %0, %65 : vector<1x6x1xi32>
    %cst_29 = arith.constant 4.000000e+00 : f32
    %67 = vector.broadcast %cst_29 : f32 to vector<1x6x1xf32>
    %68 = arith.select %66, %67, %64 : vector<1x6x1xi1>, vector<1x6x1xf32>
    %c2_i32_30 = arith.constant 2 : i32
    %69 = vector.broadcast %c2_i32_30 : i32 to vector<1x6x1xi32>
    %70 = arith.cmpi eq, %0, %69 : vector<1x6x1xi32>
    %cst_31 = arith.constant 4.000000e+00 : f32
    %71 = vector.broadcast %cst_31 : f32 to vector<1x6x1xf32>
    %72 = arith.select %70, %71, %68 : vector<1x6x1xi1>, vector<1x6x1xf32>
    %c3_i32_32 = arith.constant 3 : i32
    %73 = vector.broadcast %c3_i32_32 : i32 to vector<1x6x1xi32>
    %74 = arith.cmpi eq, %0, %73 : vector<1x6x1xi32>
    %cst_33 = arith.constant 2.000000e+00 : f32
    %75 = vector.broadcast %cst_33 : f32 to vector<1x6x1xf32>
    %76 = arith.select %74, %75, %72 : vector<1x6x1xi1>, vector<1x6x1xf32>
    %c4_i32_34 = arith.constant 4 : i32
    %77 = vector.broadcast %c4_i32_34 : i32 to vector<1x6x1xi32>
    %78 = arith.cmpi eq, %0, %77 : vector<1x6x1xi32>
    %cst_35 = arith.constant 2.000000e+00 : f32
    %79 = vector.broadcast %cst_35 : f32 to vector<1x6x1xf32>
    %80 = arith.select %78, %79, %76 : vector<1x6x1xi1>, vector<1x6x1xf32>
    %c5_i32_36 = arith.constant 5 : i32
    %81 = vector.broadcast %c5_i32_36 : i32 to vector<1x6x1xi32>
    %82 = arith.cmpi eq, %0, %81 : vector<1x6x1xi32>
    %cst_37 = arith.constant 2.000000e+00 : f32
    %83 = vector.broadcast %cst_37 : f32 to vector<1x6x1xf32>
    %84 = arith.select %82, %83, %80 : vector<1x6x1xi1>, vector<1x6x1xf32>
    %cst_38 = arith.constant 2.500000e-01 : f32
    %85 = vector.broadcast %cst_38 : f32 to vector<1x6x1xf32>
    %c1_i32_39 = arith.constant 1 : i32
    %86 = vector.broadcast %c1_i32_39 : i32 to vector<1x6x1xi32>
    %87 = arith.cmpi eq, %0, %86 : vector<1x6x1xi32>
    %cst_40 = arith.constant 2.500000e-01 : f32
    %88 = vector.broadcast %cst_40 : f32 to vector<1x6x1xf32>
    %89 = arith.select %87, %88, %85 : vector<1x6x1xi1>, vector<1x6x1xf32>
    %c2_i32_41 = arith.constant 2 : i32
    %90 = vector.broadcast %c2_i32_41 : i32 to vector<1x6x1xi32>
    %91 = arith.cmpi eq, %0, %90 : vector<1x6x1xi32>
    %cst_42 = arith.constant 2.500000e-01 : f32
    %92 = vector.broadcast %cst_42 : f32 to vector<1x6x1xf32>
    %93 = arith.select %91, %92, %89 : vector<1x6x1xi1>, vector<1x6x1xf32>
    %c3_i32_43 = arith.constant 3 : i32
    %94 = vector.broadcast %c3_i32_43 : i32 to vector<1x6x1xi32>
    %95 = arith.cmpi eq, %0, %94 : vector<1x6x1xi32>
    %cst_44 = arith.constant 5.000000e-01 : f32
    %96 = vector.broadcast %cst_44 : f32 to vector<1x6x1xf32>
    %97 = arith.select %95, %96, %93 : vector<1x6x1xi1>, vector<1x6x1xf32>
    %c4_i32_45 = arith.constant 4 : i32
    %98 = vector.broadcast %c4_i32_45 : i32 to vector<1x6x1xi32>
    %99 = arith.cmpi eq, %0, %98 : vector<1x6x1xi32>
    %cst_46 = arith.constant 5.000000e-01 : f32
    %100 = vector.broadcast %cst_46 : f32 to vector<1x6x1xf32>
    %101 = arith.select %99, %100, %97 : vector<1x6x1xi1>, vector<1x6x1xf32>
    %c5_i32_47 = arith.constant 5 : i32
    %102 = vector.broadcast %c5_i32_47 : i32 to vector<1x6x1xi32>
    %103 = arith.cmpi eq, %0, %102 : vector<1x6x1xi32>
    %cst_48 = arith.constant 5.000000e-01 : f32
    %104 = vector.broadcast %cst_48 : f32 to vector<1x6x1xf32>
    %105 = arith.select %103, %104, %101 : vector<1x6x1xi1>, vector<1x6x1xf32>
    %cst_49 = arith.constant 1.000000e+00 : f32
    %106 = vector.broadcast %cst_49 : f32 to vector<1x6x1xf32>
    %c1_i32_50 = arith.constant 1 : i32
    %107 = vector.broadcast %c1_i32_50 : i32 to vector<1x6x1xi32>
    %108 = arith.cmpi eq, %0, %107 : vector<1x6x1xi32>
    %cst_51 = arith.constant 8.000000e+00 : f32
    %109 = vector.broadcast %cst_51 : f32 to vector<1x6x1xf32>
    %110 = arith.select %108, %109, %106 : vector<1x6x1xi1>, vector<1x6x1xf32>
    %c2_i32_52 = arith.constant 2 : i32
    %111 = vector.broadcast %c2_i32_52 : i32 to vector<1x6x1xi32>
    %112 = arith.cmpi eq, %0, %111 : vector<1x6x1xi32>
    %cst_53 = arith.constant 6.400000e+01 : f32
    %113 = vector.broadcast %cst_53 : f32 to vector<1x6x1xf32>
    %114 = arith.select %112, %113, %110 : vector<1x6x1xi1>, vector<1x6x1xf32>
    %c3_i32_54 = arith.constant 3 : i32
    %115 = vector.broadcast %c3_i32_54 : i32 to vector<1x6x1xi32>
    %116 = arith.cmpi eq, %0, %115 : vector<1x6x1xi32>
    %cst_55 = arith.constant 5.120000e+02 : f32
    %117 = vector.broadcast %cst_55 : f32 to vector<1x6x1xf32>
    %118 = arith.select %116, %117, %114 : vector<1x6x1xi1>, vector<1x6x1xf32>
    %c4_i32_56 = arith.constant 4 : i32
    %119 = vector.broadcast %c4_i32_56 : i32 to vector<1x6x1xi32>
    %120 = arith.cmpi eq, %0, %119 : vector<1x6x1xi32>
    %cst_57 = arith.constant 2.560000e+03 : f32
    %121 = vector.broadcast %cst_57 : f32 to vector<1x6x1xf32>
    %122 = arith.select %120, %121, %118 : vector<1x6x1xi1>, vector<1x6x1xf32>
    %c5_i32_58 = arith.constant 5 : i32
    %123 = vector.broadcast %c5_i32_58 : i32 to vector<1x6x1xi32>
    %124 = arith.cmpi eq, %0, %123 : vector<1x6x1xi32>
    %cst_59 = arith.constant 1.280000e+04 : f32
    %125 = vector.broadcast %cst_59 : f32 to vector<1x6x1xf32>
    %126 = arith.select %124, %125, %122 : vector<1x6x1xi1>, vector<1x6x1xf32>
    %c0 = arith.constant 0 : index
    %c0_60 = arith.constant 0 : index
    %c0_61 = arith.constant 0 : index
    %127 = vector.load %arg1[%c0, %c0_60, %c0_61] : memref<2x6x512xf32, #tpu.memory_space<vmem>>, vector<2x6x512xf32>
    %128 = vector.broadcast %21 : vector<1x6x1xf32> to vector<2x6x512xf32>
    %129 = arith.addf %127, %128 : vector<2x6x512xf32>
    %130 = math.tanh %129 : vector<2x6x512xf32>
    %131 = vector.broadcast %42 : vector<1x6x1xf32> to vector<2x6x512xf32>
    %132 = arith.mulf %130, %131 : vector<2x6x512xf32>
    %133 = vector.broadcast %63 : vector<1x6x1xf32> to vector<2x6x512xf32>
    %134 = arith.subf %132, %133 : vector<2x6x512xf32>
    %135 = math.roundeven %134 : vector<2x6x512xf32>
    %136 = vector.broadcast %105 : vector<1x6x1xf32> to vector<2x6x512xf32>
    %137 = arith.mulf %135, %136 : vector<2x6x512xf32>
    %c0_62 = arith.constant 0 : index
    %c0_63 = arith.constant 0 : index
    %c0_64 = arith.constant 0 : index
    %138 = vector.load %arg2[%c0_62, %c0_63, %c0_64] : memref<2x6x512xf32, #tpu.memory_space<vmem>>, vector<2x6x512xf32>
    tpu.vector_store %arg2[%c0_62, %c0_63, %c0_64], %137 {strides = array<i32>} : memref<2x6x512xf32, #tpu.memory_space<vmem>>, vector<2x6x512xf32>,
    %139 = vector.broadcast %84 : vector<1x6x1xf32> to vector<2x6x512xf32>
    %140 = arith.addf %135, %139 : vector<2x6x512xf32>
    %141 = vector.broadcast %126 : vector<1x6x1xf32> to vector<2x6x512xf32>
    %142 = arith.mulf %140, %141 : vector<2x6x512xf32>
    %cst_65 = arith.constant dense<0.000000e+00> : vector<2x512xf32>
    %143 = vector.multi_reduction <add>, %142, %cst_65 [1] : vector<2x6x512xf32> to vector<2x512xf32>
    %144 = arith.fptosi %143 : vector<2x512xf32> to vector<2x512xi32>
    %c0_66 = arith.constant 0 : index
    %c0_67 = arith.constant 0 : index
    %145 = vector.load %arg3[%c0_66, %c0_67] : memref<2x512xi32, #tpu.memory_space<vmem>>, vector<2x512xi32>
    tpu.vector_store %arg3[%c0_66, %c0_67], %144 {strides = array<i32>} : memref<2x512xi32, #tpu.memory_space<vmem>>, vector<2x512xi32>,
    return
  }
  func.func @transform_0(%arg0: i32) -> (i32, i32, i32) {
    %c0_i32 = arith.constant 0 : i32
    %c0_i32_0 = arith.constant 0 : i32
    %c0_i32_1 = arith.constant 0 : i32
    return %c0_i32, %c0_i32_0, %arg0 : i32, i32, i32
  }
  func.func @transform_1(%arg0: i32) -> (i32, i32, i32) {
    %c0_i32 = arith.constant 0 : i32
    %c0_i32_0 = arith.constant 0 : i32
    %c0_i32_1 = arith.constant 0 : i32
    return %c0_i32, %c0_i32_0, %arg0 : i32, i32, i32
  }
  func.func @transform_2(%arg0: i32) -> (i32, i32) {
    %c0_i32 = arith.constant 0 : i32
    %c0_i32_0 = arith.constant 0 : i32
    return %c0_i32, %arg0 : i32, i32
  }
}

</mosaic_0001>

<bundles_post_ra>
// kernel: tpu_custom_call.1
= control target key start
LH: loop header
LB: loop body
LE: loop exit
PB: predicated region body
PF: predicated region fallthrough
CT: control target
= control target key end

     0   :  { %8 = vsyncpa [#allocation5], 0  ;;  %s988_s0 = inlined_call_operand.vmem [shape: f32[2,6,1024], index: 0, kind: input, shape index: {}]   ;;  %s989_s1 = inlined_call_operand.vmem [shape: f32[2,6,1024], index: 1, kind: output, shape index: {0}]   ;;  %s990_s2 = inlined_call_operand.hbm [shape: s32[2,1024], index: 2, kind: output, shape index: {1}]  }
   0x1   :  { %10 = vsyncpa [#allocation5 + $0x1], 0  ;;  %s749_s9 = smov 0   ;;  %s751_s10 = smov 0  }
   0x2   :  { %s753_s11 = smov 0   ;;  %s755_s12 = smov 0  }
   0x3 LB: > { %s770_s13 = sadd.s32 4294967295, %s724_s12   ;;  %s555_s14 = sadd.s32 4294967294, %s724_s12   ;;  %s724_s12 = sphi %s755_s12, %s998_s12   ;;  %s720_s11 = sphi %s753_s11, %s997_s11   ;;  %s716_s10 = sphi %s751_s10, %s996_s10   ;;  %s712_s9 = sphi %s749_s9, %s995_s9  }
   0x4   : > { %s774_s15 = sadd.s32 1, %s724_s12   ;;  %s23_s16 = sadd.s32 1, %s720_s11 }
   0x5   : > { %s20_s17 = ssub.s32 %s724_s12, %s774_s15  ;;  %p30_p0 = scmp.ne.s32.totalorder %s720_s11, %s716_s10 }
   0x6   : > { %p21_p1 = scmp.eq.s32.totalorder %s20_s17, 0  ;;  %p31_p2 = scmp.eq.s32.totalorder %s724_s12, 0 }
   0x7   : > { %p60_p3 = scmp.eq.s32.totalorder %s770_s13, 1  ;;  %p91_p4 = scmp.ne.s32.totalorder %s716_s10, %s712_s9 }
   0x8   : > { %s786_s18 = scalar_select %p21_p1, %s720_s11, %s23_s16  }
   0x9   : > { %p32_p5 = por %p31_p2, %p30_p0  ;;  %p788_p6 = por %p60_p3, %p30_p0 }
   0xa   : > { %p92_p7 = scmp.eq.s32.totalorder %s555_s14, 1  ;;  %p991_p9 = scmp.ge.s32.totalorder %s724_s12, 2 }
   0xc   : > { %p792_p8 = por %p92_p7, %p91_p4  ;;  %108 = sbr.rel (%p991_p9) target bundleno = 27 (0x1b), region = 16 }
  0x13   : > { %111 = sbr.rel (!%p32_p5) target bundleno = 27 (0x1b), region = 20  ;;  %s113_s21 = sand.u32 (%p32_p5), 1, %s720_s11  }
  0x14   : > { %s573_s22 = sshll.u32 (%p32_p5), %s724_s12, 5  ;;  %s558_s23 = sshll.u32 (%p32_p5), %s113_s21, 6 }
  0x15   : > { %s118_s26 = scalar_lea.vmem (%p32_p5), %s988_s0, %s573_s22  ;;  %s115_s27 = scalar_lea.vmem (%p32_p5), [#allocation2], %s558_s23 }
  0x16   : > { %v131_v0 = vld [vmem:[%s118_s26] sm:$0xff] (%p32_p5)  ;;  %v133_v1 = vld [vmem:[%s118_s26 + $0x8] sm:$0xff] (%p32_p5)  ;;  %v135_v2 = vld [vmem:[%s118_s26 + $0x10] sm:$0xff] (%p32_p5) }
  0x17   : > { %132 = vst [vmem:[%s115_s27] sm:$0xff] (%p32_p5), %v131_v0  ;;  %134 = vst [vmem:[%s115_s27 + $0x8] sm:$0xff] (%p32_p5), %v133_v1  ;;  %v137_v3 = vld [vmem:[%s118_s26 + $0x18] sm:$0xff] (%p32_p5)  ;;  %v139_v4 = vld [vmem:[%s118_s26 + $0x40] sm:$0xff] (%p32_p5) }
  0x18   : > { %136 = vst [vmem:[%s115_s27 + $0x10] sm:$0xff] (%p32_p5), %v135_v2  ;;  %v141_v5 = vld [vmem:[%s118_s26 + $0x48] sm:$0xff] (%p32_p5)  ;;  %138 = vst [vmem:[%s115_s27 + $0x18] sm:$0xff] (%p32_p5), %v137_v3  ;;  %v143_v6 = vld [vmem:[%s118_s26 + $0x50] sm:$0xff] (%p32_p5) }
  0x19   : > { %140 = vst [vmem:[%s115_s27 + $0x20] sm:$0xff] (%p32_p5), %v139_v4  ;;  %142 = vst [vmem:[%s115_s27 + $0x28] sm:$0xff] (%p32_p5), %v141_v5  ;;  %v145_v7 = vld [vmem:[%s118_s26 + $0x58] sm:$0xff] (%p32_p5) }
  0x1a   : > { %144 = vst [vmem:[%s115_s27 + $0x30] sm:$0xff] %v143_v6  ;;  %146 = vst [vmem:[%s115_s27 + $0x38] sm:$0xff] %v145_v7 }
  0x1b PF: > { %p561_p10 = scmp.ge.s32.totalorder %s724_s12, 1  ;;  %p151_p11 = scmp.lt.s32.totalorder %s724_s12, 3 }
  0x1d   : > { %p152_p12 = pnand %p561_p10, %p151_p11 }
  0x1e   : > { %s807_s28 = sand.u32 (!%p152_p12), 1, %s716_s10   ;;  %v186_v8 = vlaneseq (!%p152_p12)  ;;  %v726_v10 = vmov (!%p152_p12), 0.14369535   ;;  %v727_v26 = vmov (!%p152_p12), 3.5035002   ;;  %v728_v28 = vmov (!%p152_p12), 1.0  }
  0x1f   : > { %155 = sbr.rel (%p152_p12) target bundleno = 131 (0x83), region = 43  ;;  %s562_s29 = sshll.u32 (!%p152_p12), %s807_s28, 6  ;;  %v729_v31 = vmov (!%p152_p12), 0.5   ;;  %v730_v37 = vmov (!%p152_p12), 0.25   ;;  %v731_v40 = vmov (!%p152_p12), 4.0   ;;  %vm293_vm5 = vcmask (!%p152_p12), 1045504  }
  0x20   : > { %v810_v9 = vshrl.u32 (!%p152_p12), %v186_v8, 7  ;;  %s819_s30 = scalar_lea.vmem (!%p152_p12), [#allocation2], %s562_s29  ;;  %s893_s3 = scalar_lea.vmem (!%p152_p12), [#allocation3], %s562_s29  ;;  %vm397_vm6 = vcmask (!%p152_p12), 1041409   ;;  %vm399_vm7 = vcmask (!%p152_p12), 1043459   ;;  %vm401_vm8 = vcmask (!%p152_p12), 1045509  }
  0x21   : > { %v213_v12 = vld [vmem:[%s819_s30] sm:$0x3f] (!%p152_p12)  ;;  %v214_v14 = vld [vmem:[%s819_s30 + $0x8] sm:$0x3f] (!%p152_p12)  ;;  %v215_v15 = vld [vmem:[%s819_s30 + $0x10] sm:$0x3f] (!%p152_p12) }
  0x22   : > { %vm188_vm0 = vcmp.eq.s32.totalorder (!%p152_p12), %v810_v9, 3  ;;  %vm190_vm1 = vcmp.eq.s32.totalorder (!%p152_p12), %v810_v9, 4  ;;  %vm192_vm2 = vcmp.eq.s32.totalorder (!%p152_p12), %v810_v9, 5  ;;  %v216_v17 = vld [vmem:[%s819_s30 + $0x18] sm:$0x3f] (!%p152_p12)  ;;  %vm206_vm3 = vcmp.eq.s32.totalorder (!%p152_p12), %v810_v9, 1 }
  0x23   : > { %v189_v11 = vsel (!%p152_p12), %vm188_vm0, 0.0, %v726_v10  ;;  %v217_v19 = vld [vmem:[%s819_s30 + $0x20] sm:$0x3f] (!%p152_p12)  ;;  %v218_v22 = vld [vmem:[%s819_s30 + $0x28] sm:$0x3f] (!%p152_p12)  ;;  %v207_v29 = vsel (!%p152_p12), %vm206_vm3, 8.0, %v728_v28 }
  0x24   : > { %v191_v13 = vsel (!%p152_p12), %vm190_vm1, 0.0, %v189_v11  ;;  %v194_v27 = vsel (!%p152_p12), %vm188_vm0, 2.002, %v727_v26  ;;  %vm208_vm4 = vcmp.eq.s32.totalorder (!%p152_p12), %v810_v9, 2  ;;  %v219_v30 = vld [vmem:[%s819_s30 + $0x30] sm:$0x3f] (!%p152_p12) }
  0x25   : > { %v193_v16 = vsel (!%p152_p12), %vm192_vm2, 0.0, %v191_v13  ;;  %v197_v32 = vsel (!%p152_p12), %vm188_vm0, 0.0, %v729_v31  ;;  %v195_v33 = vsel (!%p152_p12), %vm190_vm1, 2.002, %v194_v27  ;;  %v209_v34 = vsel (!%p152_p12), %vm208_vm4, 64.0, %v207_v29  ;;  %s564_s4 = sshll.u32 (!%p152_p12), %s807_s28, 3 }
  0x26   : > { %v221_v18 = vadd.f32 %v213_v12, %v193_v16  ;;  %v222_v20 = vadd.f32 %v214_v14, %v193_v16  ;;  %v223_v21 = vadd.f32 %v215_v15, %v193_v16  ;;  %v224_v23 = vadd.f32 %v216_v17, %v193_v16  ;;  %v220_v36 = vld [vmem:[%s819_s30 + $0x38] sm:$0x3f]  ;;  %s182_s5 = scalar_lea.vmem [#allocation4], %s564_s4  ;;  %s411_s6 = scalar_lea.sflag [#allocation5], %s807_s28 }
  0x27   : > { %v225_v24 = vadd.f32 %v217_v19, %v193_v16  ;;  %v226_v25 = vadd.f32 %v218_v22, %v193_v16  ;;  %v227_v35 = vadd.f32 %v219_v30, %v193_v16  ;;  %v203_v38 = vsel %vm188_vm0, 0.5, %v730_v37  ;;  %s574_s7 = sshll.u32 (%p788_p6), %s770_s13, 5 }
  0x28   : > { %646 = vtanh.f32 %v221_v18  ;;  %v198_v39 = vsel %vm190_vm1, 0.0, %v197_v32  ;;  %v200_v41 = vsel %vm188_vm0, 2.0, %v731_v40  ;;  %v849_v43 = vsel %vm192_vm2, 2.002, %v195_v33  ;;  %s420_s16 = scalar_lea.vmem (%p788_p6), %s989_s1, %s574_s7 }
  0x29   : > { %648 = vtanh.f32 %v222_v20  ;;  %v210_v44 = vsel %vm188_vm0, 512.0, %v209_v34  ;;  %v228_v45 = vadd.f32 %v220_v36, %v193_v16  ;;  %v204_v47 = vsel %vm190_vm1, 0.5, %v203_v38 }
  0x2a   : > { %650 = vtanh.f32 %v223_v21  ;;  %v858_v50 = vsel %vm192_vm2, 0.0, %v198_v39  ;;  %v201_v51 = vsel %vm190_vm1, 2.0, %v200_v41  ;;  %v211_v54 = vsel %vm190_vm1, 2560.0, %v210_v44 }
  0x2b   : > { %652 = vtanh.f32 %v224_v23  ;;  %v869_v58 = vsel %vm192_vm2, 0.5, %v204_v47  ;;  %v875_v62 = vsel %vm192_vm2, 2.0, %v201_v51  ;;  %v881_v2 = vsel %vm192_vm2, 12800.0, %v211_v54 }
  0x2c   : > { %654 = vtanh.f32 %v225_v24  ;;  %vm403_vm9 = vcmask 1047559  }
  0x2d   : > { %656 = vtanh.f32 %v226_v25 }
  0x2e   : > { %658 = vtanh.f32 %v227_v35 }
  0x2f   : > { %660 = vtanh.f32 %v228_v45 }
  0x32   : > { %v647_v42 = vpop.eup %646 }
  0x33   : > { %v649_v46 = vpop.eup %648  ;;  %v237_v48 = vmul.f32 %v647_v42, %v849_v43 }
  0x34   : > { %v651_v49 = vpop.eup %650  ;;  %v238_v52 = vmul.f32 %v649_v46, %v849_v43 }
  0x35   : > { %v653_v53 = vpop.eup %652  ;;  %v245_v55 = vsub.f32 %v237_v48, %v858_v50  ;;  %v239_v56 = vmul.f32 %v651_v49, %v849_v43 }
  0x36   : > { %v655_v57 = vpop.eup %654  ;;  %v246_v59 = vsub.f32 %v238_v52, %v858_v50  ;;  %v240_v60 = vmul.f32 %v653_v53, %v849_v43 }
  0x37   : > { %v657_v61 = vpop.eup %656  ;;  %v576_v63 = vround.rtne.f32 %v245_v55  ;;  %v247_v0 = vsub.f32 %v239_v56, %v858_v50  ;;  %v241_v1 = vmul.f32 %v655_v57, %v849_v43 }
  0x38   : > { %v577_v3 = vround.rtne.f32 %v246_v59  ;;  %v248_v4 = vsub.f32 %v240_v60, %v858_v50  ;;  %v242_v5 = vmul.f32 %v657_v61, %v849_v43  ;;  %v659_v23 = vpop.eup %658 }
  0x39   : > { %v261_v6 = vmul.f32 %v576_v63, %v869_v58  ;;  %v277_v7 = vadd.f32 %v576_v63, %v875_v62  ;;  %v578_v8 = vround.rtne.f32 %v247_v0  ;;  %v249_v10 = vsub.f32 %v241_v1, %v858_v50  ;;  %v661_v36 = vpop.eup %660 }
  0x3a   : > { %v262_v11 = vmul.f32 %v577_v3, %v869_v58  ;;  %v278_v12 = vadd.f32 %v577_v3, %v875_v62  ;;  %v579_v13 = vround.rtne.f32 %v248_v4  ;;  %v250_v14 = vsub.f32 %v242_v5, %v858_v50 }
  0x3b   : > { %269 = vst [vmem:[%s893_s3] sm:$0x3f] %v261_v6  ;;  %v285_v15 = vmul.f32 %v277_v7, %v881_v2  ;;  %v263_v16 = vmul.f32 %v578_v8, %v869_v58  ;;  %v279_v17 = vadd.f32 %v578_v8, %v875_v62  ;;  %v580_v18 = vround.rtne.f32 %v249_v10 }
  0x3c   : > { %270 = vst [vmem:[%s893_s3 + $0x8] sm:$0x3f] %v262_v11  ;;  %v286_v19 = vmul.f32 %v278_v12, %v881_v2  ;;  %v264_v20 = vmul.f32 %v579_v13, %v869_v58  ;;  %v280_v21 = vadd.f32 %v579_v13, %v875_v62  ;;  %v581_v22 = vround.rtne.f32 %v250_v14 }
  0x3d   : > { %v294_v24 = vsel %vm293_vm5, %v285_v15, 0.0  ;;  %271 = vst [vmem:[%s893_s3 + $0x10] sm:$0x3f] %v263_v16  ;;  %v287_v25 = vmul.f32 %v279_v17, %v881_v2  ;;  %v265_v26 = vmul.f32 %v580_v18, %v869_v58  ;;  %v281_v27 = vadd.f32 %v580_v18, %v875_v62 }
  0x3e   : > { %v295_v28 = vrot.slane %v294_v24, 4  ;;  %v301_v29 = vsel %vm293_vm5, %v286_v19, 0.0  ;;  %272 = vst [vmem:[%s893_s3 + $0x18] sm:$0x3f] %v264_v20  ;;  %v288_v30 = vmul.f32 %v280_v21, %v881_v2  ;;  %v266_v31 = vmul.f32 %v581_v22, %v869_v58 }
  0x3f   : > { %v302_v32 = vrot.slane %v301_v29, 4  ;;  %v308_v33 = vsel %vm293_vm5, %v287_v25, 0.0  ;;  %273 = vst [vmem:[%s893_s3 + $0x20] sm:$0x3f] %v265_v26  ;;  %v289_v34 = vmul.f32 %v281_v27, %v881_v2  ;;  %v282_v35 = vadd.f32 %v581_v22, %v875_v62 }
  0x40   : > { %v296_v37 = vadd.f32 %v295_v28, %v294_v24  ;;  %v309_v38 = vrot.slane %v308_v33, 4  ;;  %v315_v39 = vsel %vm293_vm5, %v288_v30, 0.0  ;;  %274 = vst [vmem:[%s893_s3 + $0x28] sm:$0x3f] %v266_v31  ;;  %v243_v40 = vmul.f32 %v659_v23, %v849_v43 }
  0x41   : > { %v303_v41 = vadd.f32 %v302_v32, %v301_v29  ;;  %v316_v42 = vrot.slane %v315_v39, 4  ;;  %v322_v44 = vsel %vm293_vm5, %v289_v34, 0.0  ;;  %v290_v45 = vmul.f32 %v282_v35, %v881_v2 }
  0x42   : > { %v310_v46 = vadd.f32 %v309_v38, %v308_v33  ;;  %v323_v47 = vrot.slane %v322_v44, 4  ;;  %v251_v48 = vsub.f32 %v243_v40, %v858_v50  ;;  %v244_v52 = vmul.f32 %v661_v36, %v849_v43 }
  0x43   : > { %v317_v49 = vadd.f32 %v316_v42, %v315_v39  ;;  %v329_v51 = vsel %vm293_vm5, %v290_v45, 0.0  ;;  %v297_v53 = vrot.slane %v296_v37, 2  ;;  %v304_v54 = vrot.slane %v303_v41, 2 }
  0x44   : > { %v324_v55 = vadd.f32 %v323_v47, %v322_v44  ;;  %v330_v56 = vrot.slane %v329_v51, 4  ;;  %v311_v57 = vrot.slane %v310_v46, 2  ;;  %v582_v60 = vround.rtne.f32 %v251_v48 }
  0x45   : > { %v318_v59 = vrot.slane %v317_v49, 2  ;;  %v252_v61 = vsub.f32 %v244_v52, %v858_v50  ;;  %v298_v4 = vadd.f32 %v297_v53, %v296_v37  ;;  %v305_v5 = vadd.f32 %v304_v54, %v303_v41 }
  0x46   : > { %v325_v63 = vrot.slane %v324_v55, 2  ;;  %v331_v0 = vadd.f32 %v330_v56, %v329_v51  ;;  %v267_v1 = vmul.f32 %v582_v60, %v869_v58  ;;  %v283_v3 = vadd.f32 %v582_v60, %v875_v62 }
  0x47   : > { %v312_v6 = vadd.f32 %v311_v57, %v310_v46  ;;  %v319_v7 = vadd.f32 %v318_v59, %v317_v49  ;;  %v583_v10 = vround.rtne.f32 %v252_v61  ;;  %v299_v14 = vrot.slane %v298_v4, 1 }
  0x48   : > { %v332_v43 = vrot.slane %v331_v0, 2  ;;  %275 = vst [vmem:[%s893_s3 + $0x30] sm:$0x3f] %v267_v1  ;;  %v291_v8 = vmul.f32 %v283_v3, %v881_v2  ;;  %v326_v11 = vadd.f32 %v325_v63, %v324_v55  ;;  %v306_v15 = vrot.slane %v305_v5, 1 }
  0x49   : > { %v268_v13 = vmul.f32 %v583_v10, %v869_v58  ;;  %v313_v16 = vrot.slane %v312_v6, 1  ;;  %v320_v17 = vrot.slane %v319_v7, 1  ;;  %v284_v19 = vadd.f32 %v583_v10, %v875_v62 }
  0x4a   : > { %v333_v12 = vadd.f32 %v332_v43, %v331_v0  ;;  %v336_v50 = vsel %vm293_vm5, %v291_v8, 0.0  ;;  %v327_v20 = vrot.slane %v326_v11, 1  ;;  %v300_v24 = vadd.f32 %v299_v14, %v298_v4  ;;  %v437_v14 = vld [vmem:[%s893_s3 + $0x10] sm:$0xff] (%p788_p6) }
  0x4b   : > { %v337_v18 = vrot.slane %v336_v50, 4  ;;  %276 = vst [vmem:[%s893_s3 + $0x38] sm:$0x3f] %v268_v13  ;;  %v292_v23 = vmul.f32 %v284_v19, %v881_v2  ;;  %v307_v25 = vadd.f32 %v306_v15, %v305_v5  ;;  %v314_v26 = vadd.f32 %v313_v16, %v312_v6  ;;  %v435_v13 = vld [vmem:[%s893_s3 + $0x8] sm:$0xff] (%p788_p6)  ;;  %v439_v15 = vld [vmem:[%s893_s3 + $0x18] sm:$0xff] (%p788_p6)  ;;  %v441_v16 = vld [vmem:[%s893_s3 + $0x20] sm:$0xff] (%p788_p6) }
  0x4c   : > { %v334_v21 = vrot.slane %v333_v12, 1  ;;  %v321_v27 = vadd.f32 %v320_v17, %v319_v7  ;;  %v328_v29 = vadd.f32 %v327_v20, %v326_v11  ;;  %v584_v33 = vtrunc.f32 %v300_v24  ;;  %v443_v17 = vld [vmem:[%s893_s3 + $0x28] sm:$0xff] (%p788_p6)  ;;  %436 = vst [vmem:[%s420_s16 + $0x8] sm:$0xff] (%p788_p6), %v435_v13  ;;  %438 = vst [vmem:[%s420_s16 + $0x10] sm:$0xff] (%p788_p6), %v437_v14 }
  0x4d   : > { %v338_v22 = vadd.f32 %v337_v18, %v336_v50  ;;  %v343_v58 = vsel %vm293_vm5, %v292_v23, 0.0  ;;  %v732_v35 = vmov 1983009808   ;;  %v586_v36 = vtrunc.f32 %v307_v25  ;;  %v433_v50 = vld [vmem:[%s893_s3] sm:$0xff] (%p788_p6)  ;;  %440 = vst [vmem:[%s420_s16 + $0x18] sm:$0xff] (%p788_p6), %v439_v15  ;;  %442 = vst [vmem:[%s420_s16 + $0x40] sm:$0xff] (%p788_p6), %v441_v16 }
  0x4e   : > { %v335_v30 = vadd.f32 %v334_v21, %v333_v12  ;;  %v344_v31 = vrot.slane %v343_v58, 4  ;;  %v361_v62 = vunpack.c.l.s4 %v732_v35  ;;  %v588_v37 = vtrunc.f32 %v314_v26  ;;  %434 = vst [vmem:[%s420_s16] sm:$0xff] (%p788_p6), %v433_v50  ;;  %444 = vst [vmem:[%s420_s16 + $0x48] sm:$0xff] (%p788_p6), %v443_v17 }
  0x4f   : > { %v339_v28 = vrot.slane %v338_v22, 2  ;;  %v590_v38 = vtrunc.f32 %v321_v27  ;;  %v592_v2 = vtrunc.f32 %v328_v29  ;;  %v585_v46 = vcvt.f32.s32 %v584_v33  ;;  %v445_v18 = vld [vmem:[%s893_s3 + $0x30] sm:$0xff] (%p788_p6) }
  0x50   : > { %v345_v34 = vadd.f32 %v344_v31, %v343_v58  ;;  %v594_v40 = vtrunc.f32 %v335_v30  ;;  %v362_v45 = vunpack.c.0.s8 %v361_v62  ;;  %v587_v47 = vcvt.f32.s32 %v586_v36  ;;  %446 = vst [vmem:[%s420_s16 + $0x50] sm:$0xff] (%p788_p6), %v445_v18 }
  0x51   : > { %v340_v32 = vadd.f32 %v339_v28, %v338_v22  ;;  %v589_v48 = vcvt.f32.s32 %v588_v37  ;;  %v591_v49 = vcvt.f32.s32 %v590_v38  ;;  %v593_v53 = vcvt.f32.s32 %v592_v2 }
  0x52   : > { %v346_v41 = vrot.slane %v345_v34, 2  ;;  %v595_v54 = vcvt.f32.s32 %v594_v40  ;;  %v358_v56 = vcombine.low %v585_v46, %v587_v47  ;;  %v365_v57 = vsub.s32 %v362_v45, %v810_v9  ;;  %v447_v19 = vld [vmem:[%s893_s3 + $0x38] sm:$0xff] (%p788_p6) }
  0x53   : > { %v341_v39 = vrot.slane %v340_v32, 1  ;;  %v359_v61 = vcombine.low %v589_v48, %v591_v49  ;;  %448 = vst [vmem:[%s420_s16 + $0x58] sm:$0xff] (%p788_p6), %v447_v19 }
  0x54   : > { %v347_v44 = vadd.f32 %v346_v41, %v345_v34  ;;  %v375_v63 = vcombine.low %v593_v53, %v595_v54  ;;  %v366_v1 = vrot.slane %v358_v56, %v365_v57 }
  0x55   : > { %v342_v42 = vadd.f32 %v341_v39, %v340_v32  ;;  %v373_v3 = vrot.slane %v359_v61, %v365_v57 }
  0x56   : > { %v348_v52 = vrot.slane %v347_v44, 1  ;;  %v383_v5 = vrot.slane %v375_v63, %v365_v57 }
  0x57   : > { %v596_v51 = vtrunc.f32 %v342_v42  ;;  %v374_v6 = vcombine.low %v366_v1, %v373_v3 }
  0x58   : > { %v349_v55 = vadd.f32 %v348_v52, %v347_v44 }
  0x59   : > { %v597_v60 = vcvt.f32.s32 %v596_v51 }
  0x5a   : > { %v598_v59 = vtrunc.f32 %v349_v55 }
  0x5c   : > { %v599_v0 = vcvt.f32.s32 %v598_v59 }
  0x5e   : > { %v376_v4 = vcombine.low %v597_v60, %v599_v0 }
  0x60   : > { %v390_v43 = vrot.slane %v376_v4, %v365_v57 }
  0x62   : > { %v391_v7 = vcombine.low %v383_v5, %v390_v43 }
  0x64   : > { %v396_v8 = vrot.slane %v391_v7, 7  ;;  %417 = sbr.rel (!%p788_p6) target bundleno = 107 (0x6b), region = 51 }
  0x66   : > { %v398_v10 = vsel %vm397_vm6, %v396_v8, %v374_v6 }
  0x67   : > { %v400_v9 = vsel %vm399_vm7, %v396_v8, %v398_v10 }
  0x68   : > { %v402_v11 = vsel %vm401_vm8, %v396_v8, %v400_v9 }
  0x69   : > { %v404_v12 = vsel %vm403_vm9, %v396_v8, %v402_v11 }
  0x6a   : > { %405 = vst [vmem:[%s182_s5] sm:$0xff] %v404_v12 }
  0x6b PF: > { %s575_s17 = sshll.u32 %s770_s13, 7  ;;  %s462_s21 = sshll.u32 %s182_s5, 4  ;;  %s463_s21 = int_to_ptr.vmem [resolvable:$true] %s462_s21 }
  0x6c   : > { %s460_s24 = scalar_lea.hbm %s990_s2, %s575_s17  ;;  %s662_s25 = scalar_lea.vmem %s463_s21, 128 }
  0x6d   : > { %p663_p13 = scmp.ne.s32.totalorder %s463_s21, %s662_s25  ;;  %s733_s26 = smov [#allocation4]  }
  0x6e   : > { %s666_s27 = sshll.u32 %s733_s26, 4  ;;  %s667_s27 = int_to_ptr.vmem [resolvable:$false] %s666_s27 }
  0x6f   : > { %p664_p0 = pnand %p663_p13, %p788_p6  ;;  %s668_s29 = scalar_lea.vmem %s667_s27, 256 }
  0x70   : > { %p669_p2 = scmp.lt.s32.totalorder %s463_s21, %s667_s27  ;;  %p670_p3 = scmp.lt.s32.totalorder %s668_s29, %s662_s25 }
  0x71   : > { %p665_p1 = pneg %p664_p0 }
  0x72   : > { %p671_p4 = por %p670_p3, %p669_p2 }
  0x74   : > { %p672_p5 = pnand %p671_p4, %p665_p1 }
  0x76   : > { %675 = shalt.err (!%p672_p5)
}
  0x77   : > { %s676_s13 = scalar_lea.hbm %s460_s24, 128  ;;  %s680_s4 = scalar_lea.hbm %s990_s2, 256 }
  0x78   : > { %p677_p7 = scmp.ne.s32.totalorder %s460_s24, %s676_s13  ;;  %p681_p12 = scmp.lt.u32.totalorder %s460_s24, %s990_s2 }
  0x79   : > { %p682_p13 = scmp.lt.u32.totalorder %s680_s4, %s676_s13  ;;  %p684_p9 = scmp.lt.u32.totalorder %s676_s13, %s460_s24 }
  0x7a   : > { %p678_p10 = pnand %p677_p7, %p788_p6 }
  0x7b   : > { %p683_p0 = por %p682_p13, %p681_p12 }
  0x7c   : > { %p679_p11 = pneg %p678_p10 }
  0x7d   : > { %p685_p2 = por %p684_p9, %p683_p0 }
  0x7f   : > { %p686_p1 = pnand %p685_p2, %p679_p11 }
  0x81   : > { %689 = shalt.err (!%p686_p1)
}
  0x82   : > { %600 = dma.vmem_to_hbm [thread:$0]  (%p788_p6), %s463_s21, 128, %s460_s24, %s411_s6  }
  0x83 PF: > { %s481_s8 = sand.u32 1, %s712_s9   ;;  %p994_p3 = scmp.ge.s32.totalorder %s724_s12, 2 }
  0x84   : > { %s482_s14 = scalar_lea.sflag [#allocation5], %s481_s8 }
  0x85   : > { %p603_p4 = pnand %p994_p3, %p792_p8 }
  0x87   : > { %707 = dma.done.wait (!%p603_p4), %s482_s14, 128  }
  0x88   : > { %709 = vsyncadd (!%p603_p4), %s482_s14, 4294967168  ;;  %p13_p9 = scmp.ge.s32.totalorder %s774_s15, 4   ;;  %s995_s9 = smov %s716_s10 }
  0x89   : > { %s996_s10 = smov %s720_s11  ;;  %s997_s11 = smov %s786_s18 }
  0x8a   : > { %s998_s12 = smov %s774_s15  ;;  %15 = sbr.rel (!%p13_p9) target bundleno = 3 (0x3), region = 122 }
  0x91   :  { %487 = vsyncpa [#allocation5], 1 }
  0x92   :  { %489 = vsyncpa [#allocation5 + $0x1], 1 }

</bundles_post_ra>
